<compile_context>
chip_gen: v7x
topology: tpu7x:2x2x1
jax: 0.10.0
libtpu: 0.0.40
codegen_flags: <defaults>
</compile_context>

<pallas_src>
import math
from functools import partial

import jax
import jax.numpy as jnp
from jax.experimental import pallas as pl
from jax.experimental.pallas import tpu as pltpu


def mlp_kernel(x_ref, w1_ref, b1_ref, w2_ref, b2_ref, w3t_ref, b3_ref, o_ref):
    # Layer 1: (TILE_B, n_in)bf16 @ (n_in, 64)bf16 -> f32 accumulate; bias+ReLU in f32.
    h1 = jnp.dot(x_ref[...], w1_ref[...], preferred_element_type=jnp.float32)
    h1 = jnp.maximum(h1 + b1_ref[...], 0.0)

    # Layer 2: cast activations to bf16 only at the dot input; accumulate in f32.
    h2 = jnp.dot(h1.astype(jnp.bfloat16), w2_ref[...],
                 preferred_element_type=jnp.float32)
    h2 = jnp.maximum(h2 + b2_ref[...], 0.0)

    # Layer 3, computed transposed so this block's output is a lane-dense
    # (1, TILE_B) row instead of a (TILE_B, 1) column.
    # h2: (TILE_B, 128) f32 -> (128, TILE_B); tile-aligned XLU transpose (XLU is idle here).
    h2t = h2.T.astype(jnp.bfloat16)
    # w3t_ref is (8, 128): row 0 holds w3^T, rows 1..7 are zero padding so the MXU
    # operand is sublane-aligned; only row 0 of the result is used.
    z8 = jnp.dot(w3t_ref[...], h2t, preferred_element_type=jnp.float32)
    z = z8[0:1, :] + b3_ref[...]                                  # (1, TILE_B) f32
    o_ref[...] = jax.nn.sigmoid(z)[None].astype(o_ref.dtype)      # (1, 1, TILE_B)


def _round_up(a, m):
    return (a + m - 1) // m * m


@partial(jax.jit, static_argnames=("tile_b",))
def mlp_forward(x, w1, b1, w2, b2, w3, b3, *, tile_b=1024):
    """x: (B, n_inputs) f32.  Weights are (in, out); biases are (1, out)."""
    B, n_in = x.shape
    n_h2 = w2.shape[1]

    # Batch tile: multiple of 128 (lane-dense output row), capped at `tile_b`.
    tile_b = _round_up(tile_b, 128)
    tile = min(tile_b, _round_up(B, 128))
    b_pad = _round_up(B, tile)
    n_blocks = b_pad // tile

    # bf16 operands for the MXU (f32 accumulation happens inside the kernel).
    xb = x.astype(jnp.bfloat16)
    if b_pad != B:
        xb = jnp.pad(xb, ((0, b_pad - B), (0, 0)))
    w1b = w1.astype(jnp.bfloat16)
    w2b = w2.astype(jnp.bfloat16)
    # Last layer is computed transposed; pad w3^T (1, 128) to 8 sublanes with zeros.
    w3t = jnp.zeros((8, n_h2), jnp.bfloat16).at[0:1, :].set(w3.T.astype(jnp.bfloat16))
    b1f = b1.astype(jnp.float32)
    b2f = b2.astype(jnp.float32)
    b3f = b3.astype(jnp.float32)

    def resident(shape):
        # Whole array, same block every grid step -> fetched once, stays in VMEM.
        return pl.BlockSpec(shape, lambda i: (0, 0))

    out = pl.pallas_call(
        mlp_kernel,
        out_shape=jax.ShapeDtypeStruct((n_blocks, 1, tile), jnp.float32),
        grid=(n_blocks,),
        in_specs=[
            pl.BlockSpec((tile, n_in), lambda i: (i, 0)),   # streamed batch tile
            resident(w1b.shape), resident(b1f.shape),
            resident(w2b.shape), resident(b2f.shape),
            resident(w3t.shape), resident(b3f.shape),
        ],
        out_specs=pl.BlockSpec((1, 1, tile), lambda i: (i, 0, 0)),
        compiler_params=pltpu.CompilerParams(
            dimension_semantics=("parallel",)),   # v7x: shard batch over both TCs
    )(xb, w1b, b1f, w2b, b2f, w3t, b3f)

    # (n_blocks, 1, tile) -> (b_pad, 1) -> drop batch padding.
    return out.reshape(b_pad, 1)[:B]


def init_params(key, n_inputs):
    """Init matching the PyTorch module's scheme (shapes stored transposed)."""
    k = jax.random.split(key, 6)

    def kaiming_uniform(key, fan_in, fan_out):
        # gain = sqrt(2) for relu -> bound = sqrt(6 / fan_in)
        bound = math.sqrt(6.0 / fan_in)
        return jax.random.uniform(key, (fan_in, fan_out), jnp.float32, -bound, bound)

    def xavier_uniform(key, fan_in, fan_out):
        bound = math.sqrt(6.0 / (fan_in + fan_out))
        return jax.random.uniform(key, (fan_in, fan_out), jnp.float32, -bound, bound)

    def bias_init(key, fan_in, fan_out):
        # PyTorch Linear default bias init: U(-1/sqrt(fan_in), 1/sqrt(fan_in))
        bound = 1.0 / math.sqrt(fan_in)
        return jax.random.uniform(key, (1, fan_out), jnp.float32, -bound, bound)

    w1 = kaiming_uniform(k[0], n_inputs, 64)
    b1 = bias_init(k[1], n_inputs, 64)
    w2 = kaiming_uniform(k[2], 64, 128)
    b2 = bias_init(k[3], 64, 128)
    w3 = xavier_uniform(k[4], 128, 1)
    b3 = bias_init(k[5], 128, 1)
    return w1, b1, w2, b2, w3, b3


if __name__ == "__main__":
    key = jax.random.PRNGKey(0)
    k_x, k_p = jax.random.split(key)

    # Small test: B=300 exercises batch padding and a 3-step grid with tile_b=128.
    B, n_inputs = 300, 32
    x = jax.random.normal(k_x, (B, n_inputs), dtype=jnp.float32)
    params = init_params(k_p, n_inputs)

    out = jax.block_until_ready(mlp_forward(x, *params, tile_b=128))
    assert out.shape == (B, 1)

    # Reference in plain JAX using the same bf16-operand / f32-accumulate recipe.
    w1, b1, w2, b2, w3, b3 = params
    bf = jnp.bfloat16
    h = jnp.maximum(jnp.dot(x.astype(bf), w1.astype(bf),
                            preferred_element_type=jnp.float32) + b1, 0.0)
    h = jnp.maximum(jnp.dot(h.astype(bf), w2.astype(bf),
                            preferred_element_type=jnp.float32) + b2, 0.0)
    ref = jax.nn.sigmoid(jnp.dot(h.astype(bf), w3.astype(bf),
                                 preferred_element_type=jnp.float32) + b3)

    err = float(jnp.max(jnp.abs(out - ref)))
    assert jnp.allclose(out, ref, atol=1e-3, rtol=1e-3), err

    print("KERNEL_OK")
</pallas_src>

<mosaic_0001>
module attributes {stable_mosaic.version = 11 : i64} {
  func.func @mlp_kernel(%arg0: i32, %arg1: memref<128x32xbf16, #tpu.memory_space<vmem>>, %arg2: memref<32x64xbf16, #tpu.memory_space<vmem>>, %arg3: memref<1x64xf32, #tpu.memory_space<vmem>>, %arg4: memref<64x128xbf16, #tpu.memory_space<vmem>>, %arg5: memref<1x128xf32, #tpu.memory_space<vmem>>, %arg6: memref<8x128xbf16, #tpu.memory_space<vmem>>, %arg7: memref<1x1xf32, #tpu.memory_space<vmem>>, %arg8: memref<1x1x128xf32, #tpu.memory_space<vmem>>) attributes {dimension_semantics = [#tpu.dimension_semantics<parallel>], iteration_bounds = array<i64: 3>, scalar_prefetch = 0 : i64, scratch_operands = 0 : i64, tpu.core_type = #tpu.core_type<tc>, window_params = [{transform_indices = @transform_0, window_bounds = array<i64: 128, 32>}, {pipeline_mode = #tpu.pipeline_mode<synchronous>, transform_indices = @transform_1, window_bounds = array<i64: 32, 64>}, {pipeline_mode = #tpu.pipeline_mode<synchronous>, transform_indices = @transform_2, window_bounds = array<i64: 1, 64>}, {pipeline_mode = #tpu.pipeline_mode<synchronous>, transform_indices = @transform_3, window_bounds = array<i64: 64, 128>}, {pipeline_mode = #tpu.pipeline_mode<synchronous>, transform_indices = @transform_4, window_bounds = array<i64: 1, 128>}, {pipeline_mode = #tpu.pipeline_mode<synchronous>, transform_indices = @transform_5, window_bounds = array<i64: 8, 128>}, {pipeline_mode = #tpu.pipeline_mode<synchronous>, transform_indices = @transform_6, window_bounds = array<i64: 1, 1>}, {transform_indices = @transform_7, window_bounds = array<i64: 1, 1, 128>}]} {
    %c0 = arith.constant 0 : index
    %c0_0 = arith.constant 0 : index
    %0 = vector.load %arg1[%c0, %c0_0] : memref<128x32xbf16, #tpu.memory_space<vmem>>, vector<128x32xbf16>
    %c0_1 = arith.constant 0 : index
    %c0_2 = arith.constant 0 : index
    %1 = vector.load %arg2[%c0_1, %c0_2] : memref<32x64xbf16, #tpu.memory_space<vmem>>, vector<32x64xbf16>
    %cst = arith.constant dense<0.000000e+00> : vector<128x64xf32>
    %2 = tpu.matmul %0, %1, %cst {dimension_numbers = #tpu.dot_dimension_numbers<[1], [0], [0], [1], [0, 0, 1, 1], [], []>} : vector<128x32xbf16>, vector<32x64xbf16>, vector<128x64xf32> -> vector<128x64xf32>
    %c0_3 = arith.constant 0 : index
    %c0_4 = arith.constant 0 : index
    %3 = vector.load %arg3[%c0_3, %c0_4] : memref<1x64xf32, #tpu.memory_space<vmem>>, vector<1x64xf32>
    %4 = vector.broadcast %3 : vector<1x64xf32> to vector<128x64xf32>
    %5 = arith.addf %2, %4 : vector<128x64xf32>
    %cst_5 = arith.constant 0.000000e+00 : f32
    %6 = vector.broadcast %cst_5 : f32 to vector<128x64xf32>
    %7 = arith.maximumf %5, %6 : vector<128x64xf32>
    %8 = arith.truncf %7 : vector<128x64xf32> to vector<128x64xbf16>
    %c0_6 = arith.constant 0 : index
    %c0_7 = arith.constant 0 : index
    %9 = vector.load %arg4[%c0_6, %c0_7] : memref<64x128xbf16, #tpu.memory_space<vmem>>, vector<64x128xbf16>
    %cst_8 = arith.constant dense<0.000000e+00> : vector<128x128xf32>
    %10 = tpu.matmul %8, %9, %cst_8 {dimension_numbers = #tpu.dot_dimension_numbers<[1], [0], [0], [1], [0, 0, 1, 1], [], []>} : vector<128x64xbf16>, vector<64x128xbf16>, vector<128x128xf32> -> vector<128x128xf32>
    %c0_9 = arith.constant 0 : index
    %c0_10 = arith.constant 0 : index
    %11 = vector.load %arg5[%c0_9, %c0_10] : memref<1x128xf32, #tpu.memory_space<vmem>>, vector<1x128xf32>
    %12 = vector.broadcast %11 : vector<1x128xf32> to vector<128x128xf32>
    %13 = arith.addf %10, %12 : vector<128x128xf32>
    %cst_11 = arith.constant 0.000000e+00 : f32
    %14 = vector.broadcast %cst_11 : f32 to vector<128x128xf32>
    %15 = arith.maximumf %13, %14 : vector<128x128xf32>
    %16 = tpu.transpose %15, [1, 0] : vector<128x128xf32> -> vector<128x128xf32>
    %17 = arith.truncf %16 : vector<128x128xf32> to vector<128x128xbf16>
    %c0_12 = arith.constant 0 : index
    %c0_13 = arith.constant 0 : index
    %18 = vector.load %arg6[%c0_12, %c0_13] : memref<8x128xbf16, #tpu.memory_space<vmem>>, vector<8x128xbf16>
    %cst_14 = arith.constant dense<0.000000e+00> : vector<8x128xf32>
    %19 = tpu.matmul %18, %17, %cst_14 {dimension_numbers = #tpu.dot_dimension_numbers<[1], [0], [0], [1], [0, 0, 1, 1], [], []>} : vector<8x128xbf16>, vector<128x128xbf16>, vector<8x128xf32> -> vector<8x128xf32>
    %20 = vector.extract_strided_slice %19 {offsets = [0, 0], sizes = [1, 128], strides = [1, 1]} : vector<8x128xf32> to vector<1x128xf32>
    %c0_15 = arith.constant 0 : index
    %c0_16 = arith.constant 0 : index
    %21 = vector.load %arg7[%c0_15, %c0_16] : memref<1x1xf32, #tpu.memory_space<vmem>>, vector<1x1xf32>
    %22 = vector.broadcast %21 : vector<1x1xf32> to vector<1x128xf32>
    %23 = arith.addf %20, %22 : vector<1x128xf32>
    %24 = arith.negf %23 : vector<1x128xf32>
    %25 = math.exp %24 : vector<1x128xf32>
    %cst_17 = arith.constant 1.000000e+00 : f32
    %26 = vector.broadcast %cst_17 : f32 to vector<1x128xf32>
    %27 = arith.addf %26, %25 : vector<1x128xf32>
    %28 = arith.divf %26, %27 : vector<1x128xf32>
    %29 = vector.shape_cast %28 : vector<1x128xf32> to vector<1x1x128xf32>
    %c0_18 = arith.constant 0 : index
    %c0_19 = arith.constant 0 : index
    %c0_20 = arith.constant 0 : index
    %30 = vector.load %arg8[%c0_18, %c0_19, %c0_20] : memref<1x1x128xf32, #tpu.memory_space<vmem>>, vector<1x1x128xf32>
    tpu.vector_store %arg8[%c0_18, %c0_19, %c0_20], %29 {strides = array<i32>} : memref<1x1x128xf32, #tpu.memory_space<vmem>>, vector<1x1x128xf32>,
    return
  }
  func.func @transform_0(%arg0: i32) -> (i32, i32) {
    %c0_i32 = arith.constant 0 : i32
    %c0_i32_0 = arith.constant 0 : i32
    return %arg0, %c0_i32 : i32, i32
  }
  func.func @transform_1(%arg0: i32) -> (i32, i32) {
    %c0_i32 = arith.constant 0 : i32
    %c0_i32_0 = arith.constant 0 : i32
    %c0_i32_1 = arith.constant 0 : i32
    return %c0_i32, %c0_i32_0 : i32, i32
  }
  func.func @transform_2(%arg0: i32) -> (i32, i32) {
    %c0_i32 = arith.constant 0 : i32
    %c0_i32_0 = arith.constant 0 : i32
    %c0_i32_1 = arith.constant 0 : i32
    return %c0_i32, %c0_i32_0 : i32, i32
  }
  func.func @transform_3(%arg0: i32) -> (i32, i32) {
    %c0_i32 = arith.constant 0 : i32
    %c0_i32_0 = arith.constant 0 : i32
    %c0_i32_1 = arith.constant 0 : i32
    return %c0_i32, %c0_i32_0 : i32, i32
  }
  func.func @transform_4(%arg0: i32) -> (i32, i32) {
    %c0_i32 = arith.constant 0 : i32
    %c0_i32_0 = arith.constant 0 : i32
    %c0_i32_1 = arith.constant 0 : i32
    return %c0_i32, %c0_i32_0 : i32, i32
  }
  func.func @transform_5(%arg0: i32) -> (i32, i32) {
    %c0_i32 = arith.constant 0 : i32
    %c0_i32_0 = arith.constant 0 : i32
    %c0_i32_1 = arith.constant 0 : i32
    return %c0_i32, %c0_i32_0 : i32, i32
  }
  func.func @transform_6(%arg0: i32) -> (i32, i32) {
    %c0_i32 = arith.constant 0 : i32
    %c0_i32_0 = arith.constant 0 : i32
    %c0_i32_1 = arith.constant 0 : i32
    return %c0_i32, %c0_i32_0 : i32, i32
  }
  func.func @transform_7(%arg0: i32) -> (i32, i32, i32) {
    %c0_i32 = arith.constant 0 : i32
    %c0_i32_0 = arith.constant 0 : i32
    %c0_i32_1 = arith.constant 0 : i32
    return %arg0, %c0_i32, %c0_i32_0 : i32, i32, i32
  }
}

</mosaic_0001>

<bundles_post_ra>
// kernel: mlp_forward.1
= control target key start
LH: loop header
LB: loop body
LE: loop exit
PB: predicated region body
PF: predicated region fallthrough
CT: control target
= control target key end

     0   :  { %s1329_s0 = inlined_call_operand.vmem [shape: bf16[384,32], index: 0, kind: input, shape index: {}]   ;;  %s1330_s1 = inlined_call_operand.vmem [shape: bf16[32,64], index: 1, kind: input, shape index: {}]   ;;  %s1331_s2 = inlined_call_operand.vmem [shape: f32[1,64], index: 2, kind: input, shape index: {}]   ;;  %s1332_s3 = inlined_call_operand.vmem [shape: bf16[64,128], index: 3, kind: input, shape index: {}]   ;;  %s1333_s4 = inlined_call_operand.vmem [shape: f32[1,128], index: 4, kind: input, shape index: {}]   ;;  %s1334_s5 = inlined_call_operand.vmem [shape: bf16[8,128], index: 5, kind: input, shape index: {}]   ;;  %s1335_s6 = inlined_call_operand.<no memory space> [shape: f32[1,1], index: 6, kind: input, shape index: {}]   ;;  %s1336_s7 = inlined_call_operand.hbm [shape: f32[3,1,128], index: 7, kind: output, shape index: {}]  }
   0x1   :  { %v12_v0 = vstv %s1335_s6 }
   0x2   :  { %13 = vst [vmem:[#allocation2] sm:$0x1] %v12_v0 }
   0x3   :  { %14 = vsyncpa [#allocation4], 0 }
   0x4   :  { %16 = vsyncpa [#allocation4 + $0x1], 0  ;;  %s1160_s26 = smov 0   ;;  %s1162_s27 = smov 0  }
   0x5   :  { %s1164_s28 = smov 0   ;;  %s1166_s29 = smov 0  }
   0x6 LB: > { %s849_s6 = sadd.s32 4294967295, %s1111_s29   ;;  %s850_s30 = sadd.s32 4294967294, %s1111_s29   ;;  %s1111_s29 = sphi %s1166_s29, %s1342_s29   ;;  %s1107_s28 = sphi %s1164_s28, %s1341_s28   ;;  %s1103_s27 = sphi %s1162_s27, %s1340_s27   ;;  %s1099_s26 = sphi %s1160_s26, %s1339_s26  }
   0x7   : > { %s1183_s8 = sadd.s32 1, %s1111_s29   ;;  %s181_s9 = sadd.s32 1, %s1107_s28 }
   0x8   : > { %s178_s10 = ssub.s32 %s1111_s29, %s1183_s8  ;;  %p191_p0 = scmp.ne.s32.totalorder %s1107_s28, %s1103_s27 }
   0x9   : > { %p179_p1 = scmp.eq.s32.totalorder %s178_s10, 0  ;;  %p192_p2 = scmp.eq.s32.totalorder %s849_s6, 2 }
   0xa   : > { %p197_p3 = scmp.ne.s32.totalorder %s1103_s27, %s1099_s26  ;;  %p198_p4 = scmp.eq.s32.totalorder %s850_s30, 2 }
   0xb   : > { %s1193_s11 = scalar_select %p179_p1, %s1107_s28, %s181_s9  }
   0xc   : > { %p1195_p5 = por %p192_p2, %p191_p0  ;;  %p1199_p6 = por %p198_p4, %p197_p3 }
   0xd   : > { %p853_p7 = scmp.ge.s32.totalorder %s1111_s29, 1  ;;  %p243_p8 = scmp.lt.s32.totalorder %s1111_s29, 4 }
   0xf   : > { %p244_p9 = pnand %p853_p7, %p243_p8 }
  0x10   : > { %v1031_v1 = vld [vmem:[%s1330_s1] sm:$0xff] (!%p244_p9)   ;;  %s1208_s16 = sshll.u32 (!%p244_p9), %s849_s6, 4  ;;  %v1032_v2 = vld [vmem:[%s1330_s1 + $0x8] sm:$0xff] (!%p244_p9)   ;;  %vm360_vm0 = vcmask (!%p244_p9), 261120   ;;  %v1043_v13 = vld [vmem:[%s1332_s3 + $0x10] sm:$0xff] (!%p244_p9)   ;;  %vm545_vm1 = vcmask (!%p244_p9), 523264  }
  0x11   : > { %247 = sbr.rel (%p244_p9) target bundleno = 917 (0x395), region = 48  ;;  %p275_p10 = scmp.lt.s32.totalorder (!%p244_p9), %s1208_s16, 47  ;;  %923 = vmatprep.subr.bf16.mxu0 (!%p244_p9), %v1031_v1  ;;  %v1041_v3 = vld [vmem:[%s1332_s3] sm:$0xff] (!%p244_p9)   ;;  %v1042_v4 = vld [vmem:[%s1332_s3 + $0x8] sm:$0xff] (!%p244_p9)   ;;  %v1044_v14 = vld [vmem:[%s1332_s3 + $0x18] sm:$0xff] (!%p244_p9)   ;;  %vm1114_vm2 = vmmov (!%p244_p9), 0  }
  0x12   : > { %924 = vmatpush3.bf16.msra.mxu0 (!%p244_p9), %v1031_v1  ;;  %943 = vmatprep.subr.bf16.mxu1 (!%p244_p9), %v1041_v3  ;;  %v856_v15 = vld [vmem:[%s1331_s2] ss:$0 sm:$0xff] (!%p244_p9)  ;;  %s272_s23 = sand.u32 (!%p244_p9), 1, %s1103_s27   ;;  %s1287_s9 = scalar_lea.hbm (!%p244_p9), %s1336_s7, %s1208_s16 }
  0x13   : > { %925 = vmatprep.subr.bf16.mxu0 (!%p244_p9), %v1032_v2  ;;  %944 = vmatpush3.bf16.msra.mxu1 (!%p244_p9), %v1041_v3  ;;  %s783_s10 = scalar_lea.sflag (!%p244_p9), [#allocation4], %s272_s23  ;;  %s1116_s15 = smov (!%p244_p9), [#allocation3]  }
  0x14   : > { %945 = vmatprep.subr.bf16.mxu1 (!%p244_p9), %v1042_v4  ;;  %s1053_s17 = sshll.u32 (!%p244_p9), %s1116_s15, 4  ;;  %s1054_s17 = int_to_ptr.vmem [resolvable:$false] %s1053_s17 }
  0x15   : > { %s1055_s18 = scalar_lea.vmem (!%p244_p9), %s1054_s17, 32 }
  0x16   : > { %926 = vmatpush3.bf16.msra.mxu0 (!%p244_p9), %v1032_v2 }
  0x17   : > { %946 = vmatpush3.bf16.msra.mxu1 (!%p244_p9), %v1042_v4 }
  0x18   : > { %s276_s21 = scalar_select %p275_p10, %s1208_s16, 47  ;;  %947 = vmatprep.subr.bf16.mxu1 %v1043_v13 }
  0x1a   : > { %s855_s24 = sshll.u32 %s276_s21, 2 }
  0x1b   : > { %s278_s30 = scalar_lea.vmem %s1329_s0, %s855_s24  ;;  %948 = vmatpush3.bf16.msra.mxu1 %v1043_v13  ;;  %s273_s24 = scalar_lea.vmem [#allocation3], %s272_s23 }
  0x1c   : > { %v1033_v5 = vld [vmem:[%s278_s30] sm:$0xff]   ;;  %v1034_v6 = vld [vmem:[%s278_s30 + $0x8] sm:$0xff]   ;;  %v1035_v7 = vld [vmem:[%s278_s30 + $0x10] sm:$0xff]   ;;  %949 = vmatprep.subr.bf16.mxu1 %v1044_v14  ;;  %s795_s25 = sshll.u32 %s273_s24, 4  ;;  %s1289_s25 = int_to_ptr.vmem [resolvable:$true] %s795_s25 }
  0x1d   : > { %927 = vmatprep.mubr.msk.bf16.mxu0 %vm360_vm0, %v1033_v5  ;;  %v1036_v8 = vld [vmem:[%s278_s30 + $0x18] sm:$0xff]   ;;  %v1037_v9 = vld [vmem:[%s278_s30 + $0x20] sm:$0xff]   ;;  %v1038_v10 = vld [vmem:[%s278_s30 + $0x28] sm:$0xff]   ;;  %s1049_s14 = scalar_lea.vmem %s1289_s25, 16  ;;  %p1056_p0 = scmp.lt.s32.totalorder %s1289_s25, %s1054_s17 }
  0x1e   : > { %928 = vmatmul.mubr.msk.bf16.vlgmr.msra.gmra.mrb[0].mxu0 %vm360_vm0, %v1034_v6  ;;  %v1039_v11 = vld [vmem:[%s278_s30 + $0x30] sm:$0xff]   ;;  %v1040_v12 = vld [vmem:[%s278_s30 + $0x38] sm:$0xff]   ;;  %p1050_p11 = scmp.ne.s32.totalorder %s1289_s25, %s1049_s14  ;;  %p1057_p1 = scmp.lt.s32.totalorder %s1055_s18, %s1049_s14 }
  0x1f   : > { %931 = vmatprep.mubr.msk.bf16.mxu0 %vm360_vm0, %v1035_v7  ;;  %950 = vmatpush3.bf16.msra.mxu1 %v1044_v14 }
  0x20   : > { %p1051_p12 = pnand %p1050_p11, %p1195_p5  ;;  %p1058_p2 = por %p1057_p1, %p1056_p0 }
  0x22   : > { %p1052_p13 = pneg %p1051_p12 }
  0x24   : > { %p1059_p3 = pnand %p1058_p2, %p1052_p13 }
  0x26   : > { %932 = vmatmul.mubr.msk.bf16.gmra.mrb[4].mxu0 %vm360_vm0, %v1036_v8  ;;  %v1252_v8 = vld [vmem:[%s1333_s4] ss:$0 sm:$0xff] }
  0x27   : > { %935 = vmatprep.mubr.msk.bf16.mxu0 %vm360_vm0, %v1037_v9 }
  0x2e   : > { %936 = vmatmul.mubr.msk.bf16.gmra.mrb[8].mxu0 %vm360_vm0, %v1038_v10 }
  0x2f   : > { %939 = vmatprep.mubr.msk.bf16.mxu0 %vm360_vm0, %v1039_v11 }
  0x36   : > { %940 = vmatmul.mubr.msk.bf16.gmra.mrb[12].mxu0 %vm360_vm0, %v1040_v12 }
  0xf1   : > { %v929_v16 = vpop.f32.mrb[0].mxu0 }
  0xf2   : > { %v428_v17 = vadd.f32 %v929_v16, %v856_v15  ;;  %v419_v18 = vpop.f32.mrb[1].mxu0 }
  0xf3   : > { %v420_v19 = vadd.f32 %v856_v15, %v419_v18  ;;  %v930_v20 = vpop.f32.mrb[2].mxu0 }
  0xf4   : > { %v431_v21 = vadd.f32 %v930_v20, %v856_v15  ;;  %v422_v22 = vpop.f32.mrb[3].mxu0  ;;  %v484_v24 = vmax.f32 %v428_v17, 0.0 }
  0xf5   : > { %v423_v23 = vadd.f32 %v856_v15, %v422_v22  ;;  %v482_v26 = vmax.f32 %v420_v19, 0.0 }
  0xf6   : > { %v485_v25 = vmax.f32 %v431_v21, 0.0 }
  0xf7   : > { %v483_v27 = vmax.f32 %v423_v23, 0.0 }
  0xf8   : > { %v499_v28 = vpack.c.bf16 %v485_v25, %v484_v24  ;;  %v1113_v24 = vmov 0.0  }
  0xf9   : > { %v933_v29 = vpop.f32.mrb[4].mxu0  ;;  %v498_v30 = vpack.c.bf16 %v483_v27, %v482_v26  ;;  %967 = vmatprep.subr.bf16.mxu0 %v1113_v24  ;;  %983 = vmatprep.mubr.msk.bf16.mxu0 %vm1114_vm2, %v1113_v24 }
  0xfa   : > { %v444_v31 = vadd.f32 %v933_v29, %v856_v15  ;;  %v435_v32 = vpop.f32.mrb[5].mxu0 }
  0xfb   : > { %v436_v33 = vadd.f32 %v856_v15, %v435_v32  ;;  %951 = vmatprep.mubr.msk.bf16.mxu1 %vm545_vm1, %v498_v30  ;;  %v934_v34 = vpop.f32.mrb[6].mxu0 }
  0xfc   : > { %v488_v35 = vmax.f32 %v444_v31, 0.0  ;;  %v447_v36 = vadd.f32 %v934_v34, %v856_v15  ;;  %952 = vmatmul.mubr.msk.bf16.vlgmr.msra.gmra.mrb[0].mxu1 %vm545_vm1, %v499_v28  ;;  %v438_v37 = vpop.f32.mrb[7].mxu0 }
  0xfd   : > { %v486_v38 = vmax.f32 %v436_v33, 0.0  ;;  %v439_v39 = vadd.f32 %v856_v15, %v438_v37 }
  0xfe   : > { %v489_v40 = vmax.f32 %v447_v36, 0.0 }
  0xff   : > { %v487_v41 = vmax.f32 %v439_v39, 0.0 }
 0x100   : > { %v501_v42 = vpack.c.bf16 %v489_v40, %v488_v35 }
 0x101   : > { %v500_v43 = vpack.c.bf16 %v487_v41, %v486_v38  ;;  %v937_v44 = vpop.f32.mrb[8].mxu0 }
 0x102   : > { %v460_v45 = vadd.f32 %v937_v44, %v856_v15  ;;  %v451_v46 = vpop.f32.mrb[9].mxu0 }
 0x103   : > { %955 = vmatprep.mubr.msk.bf16.mxu1 %vm545_vm1, %v500_v43  ;;  %v452_v47 = vadd.f32 %v856_v15, %v451_v46  ;;  %v938_v48 = vpop.f32.mrb[10].mxu0 }
 0x104   : > { %956 = vmatmul.mubr.msk.bf16.gmra.mrb[4].mxu1 %vm545_vm1, %v501_v42  ;;  %v492_v49 = vmax.f32 %v460_v45, 0.0  ;;  %v463_v50 = vadd.f32 %v938_v48, %v856_v15  ;;  %v454_v51 = vpop.f32.mrb[11].mxu0 }
 0x105   : > { %v490_v52 = vmax.f32 %v452_v47, 0.0  ;;  %v455_v53 = vadd.f32 %v856_v15, %v454_v51 }
 0x106   : > { %v493_v54 = vmax.f32 %v463_v50, 0.0 }
 0x107   : > { %v491_v55 = vmax.f32 %v455_v53, 0.0 }
 0x108   : > { %v503_v56 = vpack.c.bf16 %v493_v54, %v492_v49 }
 0x109   : > { %v502_v57 = vpack.c.bf16 %v491_v55, %v490_v52  ;;  %v941_v58 = vpop.f32.mrb[12].mxu0 }
 0x10a   : > { %v476_v59 = vadd.f32 %v941_v58, %v856_v15  ;;  %v467_v60 = vpop.f32.mrb[13].mxu0  ;;  %v764_v58 = vld [vmem:[#allocation2] sm:$0x1] }
 0x10b   : > { %959 = vmatprep.mubr.msk.bf16.mxu1 %vm545_vm1, %v502_v57  ;;  %v468_v61 = vadd.f32 %v856_v15, %v467_v60  ;;  %v942_v62 = vpop.f32.mrb[14].mxu0 }
 0x10c   : > { %960 = vmatmul.mubr.msk.bf16.gmra.mrb[8].mxu1 %vm545_vm1, %v503_v56  ;;  %v496_v63 = vmax.f32 %v476_v59, 0.0  ;;  %v479_v0 = vadd.f32 %v942_v62, %v856_v15  ;;  %v470_v1 = vpop.f32.mrb[15].mxu0  ;;  %v1115_v59 = vmov 0  }
 0x10d   : > { %v494_v2 = vmax.f32 %v468_v61, 0.0  ;;  %v471_v3 = vadd.f32 %v856_v15, %v470_v1  ;;  %1029 = vset.pattern.permute.xlu1 %v1115_v59 }
 0x10e   : > { %v497_v4 = vmax.f32 %v479_v0, 0.0  ;;  %767 = vperm.xlu1 %1029, %v764_v58  }
 0x10f   : > { %v495_v5 = vmax.f32 %v471_v3, 0.0 }
 0x110   : > { %v505_v6 = vpack.c.bf16 %v497_v4, %v496_v63 }
 0x111   : > { %v504_v7 = vpack.c.bf16 %v495_v5, %v494_v2 }
 0x113   : > { %963 = vmatprep.mubr.msk.bf16.mxu1 %vm545_vm1, %v504_v7 }
 0x114   : > { %964 = vmatmul.mubr.msk.bf16.gmra.mrb[12].mxu1 %vm545_vm1, %v505_v6 }
 0x1cf   : > { %v953_v9 = vpop.f32.mrb[0].mxu1 }
 0x1d0   : > { %v604_v10 = vpop.f32.mrb[1].mxu1  ;;  %v613_v16 = vadd.f32 %v953_v9, %v1252_v8 }
 0x1d1   : > { %v954_v11 = vpop.f32.mrb[2].mxu1  ;;  %v605_v12 = vadd.f32 %v1252_v8, %v604_v10 }
 0x1d2   : > { %v607_v13 = vpop.f32.mrb[3].mxu1  ;;  %v669_v22 = vmax.f32 %v613_v16, 0.0  ;;  %v616_v23 = vadd.f32 %v954_v11, %v1252_v8 }
 0x1d3   : > { %v608_v14 = vadd.f32 %v1252_v8, %v607_v13  ;;  %v667_v15 = vmax.f32 %v605_v12, 0.0 }
 0x1d4   : > { %v670_v25 = vmax.f32 %v616_v23, 0.0 }
 0x1d5   : > { %683 = vxpose.xlu0.b32.start [1/16] %v667_v15, 128  ;;  %v668_v17 = vmax.f32 %v608_v14, 0.0 }
 0x1d7   : > { %v957_v18 = vpop.f32.mrb[4].mxu1 }
 0x1d8   : > { %v620_v19 = vpop.f32.mrb[5].mxu1  ;;  %v629_v33 = vadd.f32 %v957_v18, %v1252_v8 }
 0x1d9   : > { %684 = vxpose.xlu0.b32.cont [2/16] %v668_v17, 128  ;;  %v958_v20 = vpop.f32.mrb[6].mxu1  ;;  %v621_v26 = vadd.f32 %v1252_v8, %v620_v19 }
 0x1da   : > { %v623_v21 = vpop.f32.mrb[7].mxu1  ;;  %v673_v39 = vmax.f32 %v629_v33, 0.0  ;;  %v632_v40 = vadd.f32 %v958_v20, %v1252_v8  ;;  %v723_v20 = vld [vmem:[%s1334_s5] sm:$0xf] }
 0x1db   : > { %v671_v31 = vmax.f32 %v621_v26, 0.0  ;;  %v624_v32 = vadd.f32 %v1252_v8, %v623_v21  ;;  %v770_v21 = vlaneseq }
 0x1dc   : > { %v674_v41 = vmax.f32 %v632_v40, 0.0 }
 0x1dd   : > { %685 = vxpose.xlu0.b32.cont [3/16] %v669_v22, 128  ;;  %v672_v34 = vmax.f32 %v624_v32, 0.0  ;;  %v771_v22 = vshrl.u32 %v770_v21, 7 }
 0x1df   : > { %v961_v27 = vpop.f32.mrb[8].mxu1  ;;  %v772_v23 = vsub.s32 0, %v771_v22 }
 0x1e0   : > { %v636_v28 = vpop.f32.mrb[9].mxu1  ;;  %v645_v45 = vadd.f32 %v961_v27, %v1252_v8 }
 0x1e1   : > { %686 = vxpose.xlu0.b32.cont [4/16] %v670_v25, 128  ;;  %v962_v29 = vpop.f32.mrb[10].mxu1  ;;  %v637_v42 = vadd.f32 %v1252_v8, %v636_v28  ;;  %v768_v25 = vpop.permute.xlu1 %767 }
 0x1e2   : > { %v639_v30 = vpop.f32.mrb[11].mxu1  ;;  %v677_v47 = vmax.f32 %v645_v45, 0.0  ;;  %v648_v48 = vadd.f32 %v962_v29, %v1252_v8  ;;  %v773_v26 = vrot.slane %v768_v25, %v772_v23 }
 0x1e3   : > { %v675_v43 = vmax.f32 %v637_v42, 0.0  ;;  %v640_v44 = vadd.f32 %v1252_v8, %v639_v30 }
 0x1e4   : > { %v678_v49 = vmax.f32 %v648_v48, 0.0 }
 0x1e5   : > { %687 = vxpose.xlu0.b32.cont [5/16] %v671_v31, 128  ;;  %v676_v46 = vmax.f32 %v640_v44, 0.0 }
 0x1e7   : > { %v965_v35 = vpop.f32.mrb[12].mxu1 }
 0x1e8   : > { %v652_v36 = vpop.f32.mrb[13].mxu1  ;;  %v661_v53 = vadd.f32 %v965_v35, %v1252_v8 }
 0x1e9   : > { %688 = vxpose.xlu0.b32.cont [6/16] %v672_v34, 128  ;;  %v966_v37 = vpop.f32.mrb[14].mxu1  ;;  %v653_v50 = vadd.f32 %v1252_v8, %v652_v36 }
 0x1ea   : > { %v655_v38 = vpop.f32.mrb[15].mxu1  ;;  %v681_v55 = vmax.f32 %v661_v53, 0.0  ;;  %v664_v56 = vadd.f32 %v966_v37, %v1252_v8 }
 0x1eb   : > { %v679_v51 = vmax.f32 %v653_v50, 0.0  ;;  %v656_v52 = vadd.f32 %v1252_v8, %v655_v38 }
 0x1ec   : > { %v682_v57 = vmax.f32 %v664_v56, 0.0 }
 0x1ed   : > { %689 = vxpose.xlu0.b32.cont [7/16] %v673_v39, 128  ;;  %v680_v54 = vmax.f32 %v656_v52, 0.0 }
 0x1f1   : > { %690 = vxpose.xlu0.b32.cont [8/16] %v674_v41, 128 }
 0x1f5   : > { %691 = vxpose.xlu0.b32.cont [9/16] %v675_v43, 128 }
 0x1f9   : > { %692 = vxpose.xlu0.b32.cont [10/16] %v676_v46, 128 }
 0x1fd   : > { %693 = vxpose.xlu0.b32.cont [11/16] %v677_v47, 128 }
 0x201   : > { %694 = vxpose.xlu0.b32.cont [12/16] %v678_v49, 128 }
 0x205   : > { %695 = vxpose.xlu0.b32.cont [13/16] %v679_v51, 128 }
 0x209   : > { %696 = vxpose.xlu0.b32.cont [14/16] %v680_v54, 128 }
 0x20d   : > { %697 = vxpose.xlu0.b32.cont [15/16] %v681_v55, 128 }
 0x211   : > { %698 = vxpose.xlu0.b32.end [16/16] %v682_v57, 128 }
 0x23a   : > { %1030 = vset.pattern.permute.xlu0 %v1115_v59 }
 0x255   : > { %v699_v60 = vpop.trf.xlu0 }
 0x259   : > { %v700_v61 = vpop.trf.xlu0 }
 0x25a   : > { %v715_v62 = vpack.c.bf16 %v700_v61, %v699_v60 }
 0x25c   : > { %968 = vmatpush3.bf16.msra.mxu0 %v715_v62 }
 0x25d   : > { %v701_v63 = vpop.trf.xlu0  ;;  %969 = vmatprep.subr.bf16.mxu0 %v1113_v24 }
 0x261   : > { %v702_v0 = vpop.trf.xlu0 }
 0x262   : > { %v716_v1 = vpack.c.bf16 %v702_v0, %v701_v63 }
 0x264   : > { %970 = vmatpush3.bf16.msra.mxu0 %v716_v1 }
 0x265   : > { %v703_v2 = vpop.trf.xlu0  ;;  %971 = vmatprep.subr.bf16.mxu0 %v1113_v24 }
 0x269   : > { %v704_v3 = vpop.trf.xlu0 }
 0x26a   : > { %v717_v4 = vpack.c.bf16 %v704_v3, %v703_v2 }
 0x26c   : > { %972 = vmatpush3.bf16.msra.mxu0 %v717_v4 }
 0x26d   : > { %v705_v5 = vpop.trf.xlu0  ;;  %973 = vmatprep.subr.bf16.mxu0 %v1113_v24 }
 0x271   : > { %v706_v6 = vpop.trf.xlu0 }
 0x272   : > { %v718_v7 = vpack.c.bf16 %v706_v6, %v705_v5 }
 0x274   : > { %974 = vmatpush3.bf16.msra.mxu0 %v718_v7 }
 0x275   : > { %v707_v8 = vpop.trf.xlu0  ;;  %975 = vmatprep.subr.bf16.mxu0 %v1113_v24 }
 0x279   : > { %v708_v9 = vpop.trf.xlu0 }
 0x27a   : > { %v719_v10 = vpack.c.bf16 %v708_v9, %v707_v8 }
 0x27c   : > { %976 = vmatpush3.bf16.msra.mxu0 %v719_v10 }
 0x27d   : > { %v709_v11 = vpop.trf.xlu0  ;;  %977 = vmatprep.subr.bf16.mxu0 %v1113_v24 }
 0x281   : > { %v710_v12 = vpop.trf.xlu0 }
 0x282   : > { %v720_v13 = vpack.c.bf16 %v710_v12, %v709_v11 }
 0x284   : > { %978 = vmatpush3.bf16.msra.mxu0 %v720_v13 }
 0x285   : > { %v711_v14 = vpop.trf.xlu0  ;;  %979 = vmatprep.subr.bf16.mxu0 %v1113_v24 }
 0x289   : > { %v712_v15 = vpop.trf.xlu0 }
 0x28a   : > { %v721_v16 = vpack.c.bf16 %v712_v15, %v711_v14 }
 0x28c   : > { %980 = vmatpush3.bf16.msra.mxu0 %v721_v16 }
 0x28d   : > { %v713_v17 = vpop.trf.xlu0  ;;  %981 = vmatprep.subr.bf16.mxu0 %v1113_v24 }
 0x291   : > { %v714_v18 = vpop.trf.xlu0 }
 0x292   : > { %v722_v19 = vpack.c.bf16 %v714_v18, %v713_v17 }
 0x294   : > { %982 = vmatpush3.bf16.msra.mxu0 %v722_v19 }
 0x297   : > { %984 = vmatmul.mubr.bf16.vlgmr.msra.gmra.mrb[16].mxu0 %v723_v20 }
 0x36a   : > { %v758_v27 = vpop.f32.mrb[16].mxu0 }
 0x36b   : > { %v774_v28 = vadd.f32 %v773_v26, %v758_v27  ;;  %v985_v29 = vpop.f32.mrb[17].mxu0 }
 0x36c   : > { %v761_v30 = vpop.f32.mrb[18].mxu0 }
 0x36d   : > { %v888_v24 = vmul.f32 -1.442695, %v774_v28  ;;  %v986_v31 = vpop.f32.mrb[19].mxu0 }
 0x36f   : > { %1045 = vpow2.f32 %v888_v24 }
 0x379   : > { %v1046_v32 = vpop.eup %1045 }
 0x37a   : > { %v778_v33 = vadd.f32 1.0, %v1046_v32 }
 0x37c   : > { %1047 = vrcp.f32 %v778_v33 }
 0x386   : > { %v1048_v34 = vpop.eup %1047 }
 0x387   : > { %781 = vst [vmem:[%s273_s24] sm:$0x1] %v1048_v34 }
 0x388   : > { %1062 = shalt.err (!%p1059_p3)
}
 0x389   : > { %s1063_s16 = scalar_lea.hbm %s1287_s9, 16  ;;  %s1067_s21 = scalar_lea.hbm %s1336_s7, 48 }
 0x38a   : > { %p1064_p4 = scmp.ne.s32.totalorder %s1287_s9, %s1063_s16  ;;  %p1068_p9 = scmp.lt.u32.totalorder %s1287_s9, %s1336_s7 }
 0x38b   : > { %p1069_p10 = scmp.lt.u32.totalorder %s1067_s21, %s1063_s16  ;;  %p1071_p12 = scmp.lt.u32.totalorder %s1063_s16, %s1287_s9 }
 0x38c   : > { %p1065_p7 = pnand %p1064_p4, %p1195_p5 }
 0x38d   : > { %p1070_p11 = por %p1069_p10, %p1068_p9 }
 0x38e   : > { %p1066_p8 = pneg %p1065_p7 }
 0x38f   : > { %p1072_p13 = por %p1071_p12, %p1070_p11 }
 0x391   : > { %p1073_p0 = pnand %p1072_p13, %p1066_p8 }
 0x393   : > { %1076 = shalt.err (!%p1073_p0)
}
 0x394   : > { %987 = dma.vmem_to_hbm [thread:$0]  (%p1195_p5), %s1289_s25, 16, %s1287_s9, %s783_s10  }
 0x395 PF: > { %p993_p1 = scmp.ge.s32.totalorder %s1111_s29, 2  ;;  %s807_s24 = sand.u32 1, %s1099_s26  }
 0x396   : > { %s808_s6 = scalar_lea.sflag [#allocation4], %s807_s24 }
 0x397   : > { %p990_p2 = pnand %p993_p1, %p1199_p6 }
 0x399   : > { %1094 = dma.done.wait (!%p990_p2), %s808_s6, 16  }
 0x39a   : > { %1096 = vsyncadd (!%p990_p2), %s808_s6, 4294967280  ;;  %p19_p3 = scmp.ge.s32.totalorder %s1183_s8, 5   ;;  %s1339_s26 = smov %s1103_s27 }
 0x39b   : > { %s1340_s27 = smov %s1107_s28  ;;  %s1341_s28 = smov %s1193_s11 }
 0x39c   : > { %s1342_s29 = smov %s1183_s8  ;;  %21 = sbr.rel (!%p19_p3) target bundleno = 6 (0x6), region = 83 }
 0x3a3   :  { %812 = vsyncpa [#allocation4], 1 }
 0x3a4   :  { %814 = vsyncpa [#allocation4 + $0x1], 1 }

</bundles_post_ra>
